<compile_context>
chip_gen: v6e
topology: v6e:2x2x1
jax: 0.10.0
libtpu: 0.0.40
codegen_flags: <defaults>
</compile_context>

<pallas_src>
import math

import jax
import jax.numpy as jnp
from jax import lax
from jax.experimental import pallas as pl
from jax.experimental.pallas import tpu as pltpu


_INV_SQRT2 = 1.0 / math.sqrt(2.0)

# Set to False automatically if pl.Buffered(1) single-buffering is rejected.
_SINGLE_BUFFER_WEIGHTS_OK = True


def _gelu_exact(x):
    # PyTorch nn.GELU() default: 0.5 * x * (1 + erf(x / sqrt(2)))
    return 0.5 * x * (1.0 + lax.erf(x * _INV_SQRT2))


def _make_mlp_kernel(n_chunks, th, cdt):
    """Kernel factory: static H-chunk count / chunk width / MXU operand dtype."""

    def kernel(x_ref, w1_ref, b1_ref, w2_ref, b2_ref, o_ref, acc_ref):
        # x_ref : (TM, C)   w1_ref: (C, H)   b1_ref: (1, H) f32
        # w2_ref: (H, C)    b2_ref: (1, C) f32
        # o_ref : (TM, C)   acc_ref: (TM, C) f32 scratch
        x = x_ref[...]
        if x.dtype != cdt:
            x = x.astype(cdt)          # in-kernel VPU cast (free under the MXU)
        for c in range(n_chunks):      # static trip count, static slices
            lo = c * th
            hi = lo + th
            h = jnp.dot(x, w1_ref[:, lo:hi],
                        preferred_element_type=jnp.float32)
            h = _gelu_exact(h + b1_ref[:, lo:hi])        # f32 bias + GELU
            p = jnp.dot(h.astype(cdt), w2_ref[lo:hi, :],
                        preferred_element_type=jnp.float32)
            if c == 0:
                acc_ref[...] = p
            else:
                acc_ref[...] += p
        o_ref[...] = (acc_ref[...] + b2_ref[...]).astype(o_ref.dtype)

    return kernel


def _vmem_capacity_bytes():
    try:
        return int(pltpu.get_tpu_info().vmem_capacity_bytes)
    except Exception:
        return 64 * 1024 * 1024  # conservative default (v7x per-core VMEM)


def _choose_th(H):
    # Hidden-dim chunk: full width when small, otherwise the largest divisor
    # of H (preferring multiples of 256) so the live hidden chunk is bounded.
    if H <= 2048:
        return H
    for cand in (2048, 1792, 1536, 1280, 1024, 896, 768, 640, 512, 384, 256, 128):
        if H % cand == 0:
            return cand
    return H


def _round_up(x, m):
    return ((x + m - 1) // m) * m


def mlp_forward(x, w1, b1, w2, b2, *, compute_dtype=jnp.bfloat16):
    """GPT MLP forward.  x: (B, T, C) -> (B, T, C).

    w1: (C, 4C), b1: (4C,), w2: (4C, C), b2: (C,) -- weights are stored as
    (in_features, out_features), i.e. the transpose of nn.Linear.weight.
    compute_dtype: MXU operand dtype (default bf16).  Accumulation is f32,
    bias/GELU math is f32, and the output keeps x.dtype.
    """
    global _SINGLE_BUFFER_WEIGHTS_OK

    B, T, C = x.shape
    H = w1.shape[1]
    out_dtype = x.dtype
    cdt = jnp.dtype(x.dtype) if compute_dtype is None else jnp.dtype(compute_dtype)

    M = B * T
    x2d = x.reshape(M, C)                      # free; cast to cdt happens in-kernel
    w1c = w1.astype(cdt)
    w2c = w2.astype(cdt)
    b1_2d = b1.reshape(1, H).astype(jnp.float32)
    b2_2d = b2.reshape(1, C).astype(jnp.float32)

    x_isz = jnp.dtype(x.dtype).itemsize
    out_isz = jnp.dtype(out_dtype).itemsize
    c_isz = cdt.itemsize

    # ---- generation-aware VMEM budgeting -------------------------------------
    cap = _vmem_capacity_bytes()               # 128 MiB (v5e/v6e), 64 MiB (v7x)
    usable = cap * 3 // 4                      # headroom for Mosaic scratch etc.
    # Resident weights (single-buffered) + f32 biases (sublane-padded to 8 rows).
    w_bytes = 2 * C * H * c_isz + 8 * (H + C) * 4

    TH = _choose_th(H)
    n_chunks = H // TH

    def _tile_bytes(tm):
        # double-buffered x/out blocks + in-kernel x cast copy
        # + f32 hidden chunk + its cdt cast copy + f32 accumulator scratch
        return (2 * tm * C * x_isz + 2 * tm * C * out_isz + tm * C * c_isz
                + tm * TH * (4 + c_isz) + tm * C * 4)

    tile_budget = max(usable - w_bytes, 2 * 1024 * 1024)
    TM = 8
    for cand in (1024, 768, 512, 256, 128, 64, 32, 16, 8):
        if _tile_bytes(cand) <= tile_budget:
            TM = cand
            break

    # Keep at least two grid steps whenever M allows it (v7x: 2 TensorCores).
    if M <= 8:
        TM = M                                  # full-dim block (always legal)
    elif 2 * TM > M:
        TM = max(8, _round_up(pl.cdiv(M, 2), 8))
    n_tiles = pl.cdiv(M, TM)

    need = w_bytes + _tile_bytes(TM)
    vmem_limit = int(min(cap * 17 // 20,                       # <= 85% of physical
                         max(32 * 1024 * 1024, need + (8 << 20))))

    cost = pl.CostEstimate(
        flops=4 * M * C * H,                    # two matmuls, 2*M*C*H each
        transcendentals=M * H,                  # erf
        bytes_accessed=M * C * (x_isz + out_isz) + 2 * C * H * c_isz + (H + C) * 4,
    )

    kernel = _make_mlp_kernel(n_chunks, TH, cdt)

    def _run(single_buffer_weights):
        def _resident_spec(shape):
            idx_map = lambda i: (0,) * len(shape)
            if single_buffer_weights:
                try:
                    return pl.BlockSpec(shape, idx_map,
                                        pipeline_mode=pl.Buffered(1))
                except (TypeError, AttributeError):
                    pass
            return pl.BlockSpec(shape, idx_map)

        out2d = pl.pallas_call(
            kernel,
            out_shape=jax.ShapeDtypeStruct((M, C), out_dtype),
            grid_spec=pltpu.PrefetchScalarGridSpec(
                num_scalar_prefetch=0,
                grid=(n_tiles,),
                in_specs=[
                    pl.BlockSpec((TM, C), lambda i: (i, 0)),   # x tile (pipelined)
                    _resident_spec((C, H)),                    # w1 resident
                    _resident_spec((1, H)),                    # b1 resident
                    _resident_spec((H, C)),                    # w2 resident
                    _resident_spec((1, C)),                    # b2 resident
                ],
                out_specs=pl.BlockSpec((TM, C), lambda i: (i, 0)),
                scratch_shapes=[pltpu.VMEM((TM, C), jnp.float32)],
            ),
            compiler_params=pltpu.CompilerParams(
                dimension_semantics=("parallel",),
                vmem_limit_bytes=vmem_limit,
            ),
            cost_estimate=cost,
        )(x2d, w1c, b1_2d, w2c, b2_2d)
        return out2d

    if _SINGLE_BUFFER_WEIGHTS_OK:
        try:
            out2d = _run(True)
            return out2d.reshape(B, T, C)
        except Exception:
            _SINGLE_BUFFER_WEIGHTS_OK = False   # fall back to default buffering
    out2d = _run(False)
    return out2d.reshape(B, T, C)


if __name__ == "__main__":
    # Small config: batch=2, seq=8, n_embd=32 (hidden = 4*32 = 128), bias=True,
    # dropout=0.0 (inference).
    B, T, C = 2, 8, 32
    H = 4 * C

    key = jax.random.PRNGKey(0)
    kx, kw1, kb1, kw2, kb2 = jax.random.split(key, 5)

    x = jax.random.normal(kx, (B, T, C), dtype=jnp.float32)

    bound1 = 1.0 / math.sqrt(C)
    bound2 = 1.0 / math.sqrt(H)
    w1 = jax.random.uniform(kw1, (C, H), jnp.float32, -bound1, bound1)
    b1 = jax.random.uniform(kb1, (H,), jnp.float32, -bound1, bound1)
    w2 = jax.random.uniform(kw2, (H, C), jnp.float32, -bound2, bound2)
    b2 = jax.random.uniform(kb2, (C,), jnp.float32, -bound2, bound2)

    # Pure-JAX reference.
    ref = x.reshape(-1, C) @ w1 + b1
    ref = 0.5 * ref * (1.0 + lax.erf(ref / math.sqrt(2.0)))
    ref = (ref @ w2 + b2).reshape(B, T, C)

    # Default path: bf16 MXU operands with f32 accumulation.
    out = jax.block_until_ready(mlp_forward(x, w1, b1, w2, b2))
    assert out.shape == (B, T, C)
    assert out.dtype == x.dtype
    assert jnp.allclose(out, ref, atol=5e-2, rtol=5e-2), "bf16 mismatch vs reference"

    # f32 MXU-operand path: tight agreement with the reference.
    out_f32 = jax.block_until_ready(
        mlp_forward(x, w1, b1, w2, b2, compute_dtype=jnp.float32))
    assert out_f32.shape == (B, T, C)
    assert jnp.allclose(out_f32, ref, atol=1e-5, rtol=1e-5), "f32 mismatch vs reference"

    print("KERNEL_OK")
</pallas_src>

<mosaic_0001>
module attributes {stable_mosaic.version = 11 : i64} {
  func.func @kernel(%arg0: i32, %arg1: memref<8x32xf32, #tpu.memory_space<vmem>>, %arg2: memref<32x128xbf16, #tpu.memory_space<vmem>>, %arg3: memref<1x128xf32, #tpu.memory_space<vmem>>, %arg4: memref<128x32xbf16, #tpu.memory_space<vmem>>, %arg5: memref<1x32xf32, #tpu.memory_space<vmem>>, %arg6: memref<8x32xf32, #tpu.memory_space<vmem>>, %arg7: memref<8x32xf32, #tpu.memory_space<vmem>>) attributes {dimension_semantics = [#tpu.dimension_semantics<parallel>], iteration_bounds = array<i64: 2>, scalar_prefetch = 0 : i64, scratch_operands = 1 : i64, tpu.core_type = #tpu.core_type<tc>, window_params = [{transform_indices = @transform_0, window_bounds = array<i64: 8, 32>}, {pipeline_mode = #tpu.pipeline_mode<synchronous>, transform_indices = @transform_1, window_bounds = array<i64: 32, 128>}, {pipeline_mode = #tpu.pipeline_mode<synchronous>, transform_indices = @transform_2, window_bounds = array<i64: 1, 128>}, {pipeline_mode = #tpu.pipeline_mode<synchronous>, transform_indices = @transform_3, window_bounds = array<i64: 128, 32>}, {pipeline_mode = #tpu.pipeline_mode<synchronous>, transform_indices = @transform_4, window_bounds = array<i64: 1, 32>}, {transform_indices = @transform_5, window_bounds = array<i64: 8, 32>}]} {
    %c0 = arith.constant 0 : index
    %c0_0 = arith.constant 0 : index
    %0 = vector.load %arg1[%c0, %c0_0] : memref<8x32xf32, #tpu.memory_space<vmem>>, vector<8x32xf32>
    %1 = arith.truncf %0 : vector<8x32xf32> to vector<8x32xbf16>
    %c0_1 = arith.constant 0 : index
    %c0_2 = arith.constant 0 : index
    %2 = vector.load %arg2[%c0_1, %c0_2] : memref<32x128xbf16, #tpu.memory_space<vmem>>, vector<32x128xbf16>
    %cst = arith.constant dense<0.000000e+00> : vector<8x128xf32>
    %3 = tpu.matmul %1, %2, %cst {dimension_numbers = #tpu.dot_dimension_numbers<[1], [0], [0], [1], [0, 0, 1, 1], [], []>} : vector<8x32xbf16>, vector<32x128xbf16>, vector<8x128xf32> -> vector<8x128xf32>
    %c0_3 = arith.constant 0 : index
    %c0_4 = arith.constant 0 : index
    %4 = vector.load %arg3[%c0_3, %c0_4] : memref<1x128xf32, #tpu.memory_space<vmem>>, vector<1x128xf32>
    %5 = vector.broadcast %4 : vector<1x128xf32> to vector<8x128xf32>
    %6 = arith.addf %3, %5 : vector<8x128xf32>
    %cst_5 = arith.constant 5.000000e-01 : f32
    %7 = vector.broadcast %cst_5 : f32 to vector<8x128xf32>
    %8 = arith.mulf %7, %6 : vector<8x128xf32>
    %cst_6 = arith.constant 0.707106769 : f32
    %9 = vector.broadcast %cst_6 : f32 to vector<8x128xf32>
    %10 = arith.mulf %6, %9 : vector<8x128xf32>
    %11 = math.erf %10 : vector<8x128xf32>
    %cst_7 = arith.constant 1.000000e+00 : f32
    %12 = vector.broadcast %cst_7 : f32 to vector<8x128xf32>
    %13 = arith.addf %12, %11 : vector<8x128xf32>
    %14 = arith.mulf %8, %13 : vector<8x128xf32>
    %15 = arith.truncf %14 : vector<8x128xf32> to vector<8x128xbf16>
    %c0_8 = arith.constant 0 : index
    %c0_9 = arith.constant 0 : index
    %16 = vector.load %arg4[%c0_8, %c0_9] : memref<128x32xbf16, #tpu.memory_space<vmem>>, vector<128x32xbf16>
    %cst_10 = arith.constant dense<0.000000e+00> : vector<8x32xf32>
    %17 = tpu.matmul %15, %16, %cst_10 {dimension_numbers = #tpu.dot_dimension_numbers<[1], [0], [0], [1], [0, 0, 1, 1], [], []>} : vector<8x128xbf16>, vector<128x32xbf16>, vector<8x32xf32> -> vector<8x32xf32>
    %c0_11 = arith.constant 0 : index
    %c0_12 = arith.constant 0 : index
    %18 = vector.load %arg7[%c0_11, %c0_12] : memref<8x32xf32, #tpu.memory_space<vmem>>, vector<8x32xf32>
    tpu.vector_store %arg7[%c0_11, %c0_12], %17 {strides = array<i32>} : memref<8x32xf32, #tpu.memory_space<vmem>>, vector<8x32xf32>,
    %c0_13 = arith.constant 0 : index
    %c0_14 = arith.constant 0 : index
    %19 = vector.load %arg7[%c0_13, %c0_14] : memref<8x32xf32, #tpu.memory_space<vmem>>, vector<8x32xf32>
    %c0_15 = arith.constant 0 : index
    %c0_16 = arith.constant 0 : index
    %20 = vector.load %arg5[%c0_15, %c0_16] : memref<1x32xf32, #tpu.memory_space<vmem>>, vector<1x32xf32>
    %21 = vector.broadcast %20 : vector<1x32xf32> to vector<8x32xf32>
    %22 = arith.addf %19, %21 : vector<8x32xf32>
    %c0_17 = arith.constant 0 : index
    %c0_18 = arith.constant 0 : index
    %23 = vector.load %arg6[%c0_17, %c0_18] : memref<8x32xf32, #tpu.memory_space<vmem>>, vector<8x32xf32>
    tpu.vector_store %arg6[%c0_17, %c0_18], %22 {strides = array<i32>} : memref<8x32xf32, #tpu.memory_space<vmem>>, vector<8x32xf32>,
    return
  }
  func.func @transform_0(%arg0: i32) -> (i32, i32) {
    %c0_i32 = arith.constant 0 : i32
    %c0_i32_0 = arith.constant 0 : i32
    return %arg0, %c0_i32 : i32, i32
  }
  func.func @transform_1(%arg0: i32) -> (i32, i32) {
    %c0_i32 = arith.constant 0 : i32
    %c0_i32_0 = arith.constant 0 : i32
    %c0_i32_1 = arith.constant 0 : i32
    return %c0_i32, %c0_i32_0 : i32, i32
  }
  func.func @transform_2(%arg0: i32) -> (i32, i32) {
    %c0_i32 = arith.constant 0 : i32
    %c0_i32_0 = arith.constant 0 : i32
    %c0_i32_1 = arith.constant 0 : i32
    return %c0_i32, %c0_i32_0 : i32, i32
  }
  func.func @transform_3(%arg0: i32) -> (i32, i32) {
    %c0_i32 = arith.constant 0 : i32
    %c0_i32_0 = arith.constant 0 : i32
    %c0_i32_1 = arith.constant 0 : i32
    return %c0_i32, %c0_i32_0 : i32, i32
  }
  func.func @transform_4(%arg0: i32) -> (i32, i32) {
    %c0_i32 = arith.constant 0 : i32
    %c0_i32_0 = arith.constant 0 : i32
    %c0_i32_1 = arith.constant 0 : i32
    return %c0_i32, %c0_i32_0 : i32, i32
  }
  func.func @transform_5(%arg0: i32) -> (i32, i32) {
    %c0_i32 = arith.constant 0 : i32
    %c0_i32_0 = arith.constant 0 : i32
    return %arg0, %c0_i32 : i32, i32
  }
}

module attributes {stable_mosaic.version = 11 : i64} {
  func.func @kernel(%arg0: i32, %arg1: memref<8x32xf32, #tpu.memory_space<vmem>>, %arg2: memref<32x128xbf16, #tpu.memory_space<vmem>>, %arg3: memref<1x128xf32, #tpu.memory_space<vmem>>, %arg4: memref<128x32xbf16, #tpu.memory_space<vmem>>, %arg5: memref<1x32xf32, #tpu.memory_space<vmem>>, %arg6: memref<8x32xf32, #tpu.memory_space<vmem>>, %arg7: memref<8x32xf32, #tpu.memory_space<vmem>>) attributes {dimension_semantics = [#tpu.dimension_semantics<parallel>], iteration_bounds = array<i64: 2>, scalar_prefetch = 0 : i64, scratch_operands = 1 : i64, tpu.core_type = #tpu.core_type<tc>, window_params = [{transform_indices = @transform_0, window_bounds = array<i64: 8, 32>}, {pipeline_mode = #tpu.pipeline_mode<synchronous>, transform_indices = @transform_1, window_bounds = array<i64: 32, 128>}, {pipeline_mode = #tpu.pipeline_mode<synchronous>, transform_indices = @transform_2, window_bounds = array<i64: 1, 128>}, {pipeline_mode = #tpu.pipeline_mode<synchronous>, transform_indices = @transform_3, window_bounds = array<i64: 128, 32>}, {pipeline_mode = #tpu.pipeline_mode<synchronous>, transform_indices = @transform_4, window_bounds = array<i64: 1, 32>}, {transform_indices = @transform_5, window_bounds = array<i64: 8, 32>}]} {
    %c0 = arith.constant 0 : index
    %c0_0 = arith.constant 0 : index
    %0 = vector.load %arg1[%c0, %c0_0] : memref<8x32xf32, #tpu.memory_space<vmem>>, vector<8x32xf32>
    %1 = arith.truncf %0 : vector<8x32xf32> to vector<8x32xbf16>
    %c0_1 = arith.constant 0 : index
    %c0_2 = arith.constant 0 : index
    %2 = vector.load %arg2[%c0_1, %c0_2] : memref<32x128xbf16, #tpu.memory_space<vmem>>, vector<32x128xbf16>
    %cst = arith.constant dense<0.000000e+00> : vector<8x128xf32>
    %3 = tpu.matmul %1, %2, %cst {dimension_numbers = #tpu.dot_dimension_numbers<[1], [0], [0], [1], [0, 0, 1, 1], [], []>} : vector<8x32xbf16>, vector<32x128xbf16>, vector<8x128xf32> -> vector<8x128xf32>
    %c0_3 = arith.constant 0 : index
    %c0_4 = arith.constant 0 : index
    %4 = vector.load %arg3[%c0_3, %c0_4] : memref<1x128xf32, #tpu.memory_space<vmem>>, vector<1x128xf32>
    %5 = vector.broadcast %4 : vector<1x128xf32> to vector<8x128xf32>
    %6 = arith.addf %3, %5 : vector<8x128xf32>
    %cst_5 = arith.constant 5.000000e-01 : f32
    %7 = vector.broadcast %cst_5 : f32 to vector<8x128xf32>
    %8 = arith.mulf %7, %6 : vector<8x128xf32>
    %cst_6 = arith.constant 0.707106769 : f32
    %9 = vector.broadcast %cst_6 : f32 to vector<8x128xf32>
    %10 = arith.mulf %6, %9 : vector<8x128xf32>
    %11 = math.erf %10 : vector<8x128xf32>
    %cst_7 = arith.constant 1.000000e+00 : f32
    %12 = vector.broadcast %cst_7 : f32 to vector<8x128xf32>
    %13 = arith.addf %12, %11 : vector<8x128xf32>
    %14 = arith.mulf %8, %13 : vector<8x128xf32>
    %15 = arith.truncf %14 : vector<8x128xf32> to vector<8x128xbf16>
    %c0_8 = arith.constant 0 : index
    %c0_9 = arith.constant 0 : index
    %16 = vector.load %arg4[%c0_8, %c0_9] : memref<128x32xbf16, #tpu.memory_space<vmem>>, vector<128x32xbf16>
    %cst_10 = arith.constant dense<0.000000e+00> : vector<8x32xf32>
    %17 = tpu.matmul %15, %16, %cst_10 {dimension_numbers = #tpu.dot_dimension_numbers<[1], [0], [0], [1], [0, 0, 1, 1], [], []>} : vector<8x128xbf16>, vector<128x32xbf16>, vector<8x32xf32> -> vector<8x32xf32>
    %c0_11 = arith.constant 0 : index
    %c0_12 = arith.constant 0 : index
    %18 = vector.load %arg7[%c0_11, %c0_12] : memref<8x32xf32, #tpu.memory_space<vmem>>, vector<8x32xf32>
    tpu.vector_store %arg7[%c0_11, %c0_12], %17 {strides = array<i32>} : memref<8x32xf32, #tpu.memory_space<vmem>>, vector<8x32xf32>,
    %c0_13 = arith.constant 0 : index
    %c0_14 = arith.constant 0 : index
    %19 = vector.load %arg7[%c0_13, %c0_14] : memref<8x32xf32, #tpu.memory_space<vmem>>, vector<8x32xf32>
    %c0_15 = arith.constant 0 : index
    %c0_16 = arith.constant 0 : index
    %20 = vector.load %arg5[%c0_15, %c0_16] : memref<1x32xf32, #tpu.memory_space<vmem>>, vector<1x32xf32>
    %21 = vector.broadcast %20 : vector<1x32xf32> to vector<8x32xf32>
    %22 = arith.addf %19, %21 : vector<8x32xf32>
    %c0_17 = arith.constant 0 : index
    %c0_18 = arith.constant 0 : index
    %23 = vector.load %arg6[%c0_17, %c0_18] : memref<8x32xf32, #tpu.memory_space<vmem>>, vector<8x32xf32>
    tpu.vector_store %arg6[%c0_17, %c0_18], %22 {strides = array<i32>} : memref<8x32xf32, #tpu.memory_space<vmem>>, vector<8x32xf32>,
    return
  }
  func.func @transform_0(%arg0: i32) -> (i32, i32) {
    %c0_i32 = arith.constant 0 : i32
    %c0_i32_0 = arith.constant 0 : i32
    return %arg0, %c0_i32 : i32, i32
  }
  func.func @transform_1(%arg0: i32) -> (i32, i32) {
    %c0_i32 = arith.constant 0 : i32
    %c0_i32_0 = arith.constant 0 : i32
    %c0_i32_1 = arith.constant 0 : i32
    return %c0_i32, %c0_i32_0 : i32, i32
  }
  func.func @transform_2(%arg0: i32) -> (i32, i32) {
    %c0_i32 = arith.constant 0 : i32
    %c0_i32_0 = arith.constant 0 : i32
    %c0_i32_1 = arith.constant 0 : i32
    return %c0_i32, %c0_i32_0 : i32, i32
  }
  func.func @transform_3(%arg0: i32) -> (i32, i32) {
    %c0_i32 = arith.constant 0 : i32
    %c0_i32_0 = arith.constant 0 : i32
    %c0_i32_1 = arith.constant 0 : i32
    return %c0_i32, %c0_i32_0 : i32, i32
  }
  func.func @transform_4(%arg0: i32) -> (i32, i32) {
    %c0_i32 = arith.constant 0 : i32
    %c0_i32_0 = arith.constant 0 : i32
    %c0_i32_1 = arith.constant 0 : i32
    return %c0_i32, %c0_i32_0 : i32, i32
  }
  func.func @transform_5(%arg0: i32) -> (i32, i32) {
    %c0_i32 = arith.constant 0 : i32
    %c0_i32_0 = arith.constant 0 : i32
    return %arg0, %c0_i32 : i32, i32
  }
}

</mosaic_0001>

<bundles_post_ra>
// kernel: tpu_custom_call.1
= control target key start
LH: loop header
LB: loop body
LE: loop exit
PB: predicated region body
PF: predicated region fallthrough
CT: control target
= control target key end

     0   :  { %10 = vsyncpa [#allocation4], 0  ;;  %s821_s0 = inlined_call_operand.vmem [shape: f32[16,32], index: 0, kind: input, shape index: {}]   ;;  %s822_s1 = inlined_call_operand.vmem [shape: bf16[32,128], index: 1, kind: input, shape index: {}]   ;;  %s823_s2 = inlined_call_operand.vmem [shape: f32[1,128], index: 2, kind: input, shape index: {}]   ;;  %s824_s3 = inlined_call_operand.vmem [shape: bf16[128,32], index: 3, kind: input, shape index: {}]   ;;  %s825_s4 = inlined_call_operand.vmem [shape: f32[1,32], index: 4, kind: input, shape index: {}]   ;;  %s826_s5 = inlined_call_operand.hbm [shape: f32[16,32], index: 5, kind: output, shape index: {}]  }
   0x1   :  { %12 = vsyncpa [#allocation4 + $0x1], 0  ;;  %s695_s18 = smov 0   ;;  %s697_s19 = smov 0  }
   0x2   :  { %s699_s20 = smov 0   ;;  %s701_s21 = smov 0  }
   0x3 LB: > { %s716_s22 = sadd.s32 4294967295, %s660_s21   ;;  %s484_s23 = sadd.s32 4294967294, %s660_s21   ;;  %s660_s21 = sphi %s701_s21, %s832_s21   ;;  %s656_s20 = sphi %s699_s20, %s831_s20   ;;  %s652_s19 = sphi %s697_s19, %s830_s19   ;;  %s648_s18 = sphi %s695_s18, %s829_s18  }
   0x4   : > { %s720_s24 = sadd.s32 1, %s660_s21   ;;  %s135_s25 = sadd.s32 1, %s656_s20 }
   0x5   : > { %s132_s26 = ssub.s32 %s660_s21, %s720_s24  ;;  %p145_p0 = scmp.ne.s32.totalorder %s656_s20, %s652_s19 }
   0x6   : > { %p133_p1 = scmp.eq.s32.totalorder %s132_s26, 0  ;;  %p146_p2 = scmp.eq.s32.totalorder %s716_s22, 1 }
   0x7   : > { %p151_p3 = scmp.ne.s32.totalorder %s652_s19, %s648_s18  ;;  %p152_p4 = scmp.eq.s32.totalorder %s484_s23, 1 }
   0x8   : > { %s731_s27 = scalar_select %p133_p1, %s656_s20, %s135_s25  }
   0x9   : > { %p733_p5 = por %p146_p2, %p145_p0  ;;  %p737_p6 = por %p152_p4, %p151_p3 }
   0xa   : > { %p487_p7 = scmp.ge.s32.totalorder %s660_s21, 1  ;;  %p189_p8 = scmp.lt.s32.totalorder %s660_s21, 3 }
   0xc   : > { %p190_p9 = pnand %p487_p7, %p189_p8 }
   0xd   : > { %p216_p10 = scmp.lt.s32.totalorder (!%p190_p9), %s716_s22, 1  ;;  %s213_s16 = sand.u32 (!%p190_p9), 1, %s652_s19  }
   0xe   : > { %193 = sbr.rel (%p190_p9) target bundleno = 461 (0x1cd), region = 40  ;;  %s504_s26 = sshll.u32 (!%p190_p9), %s716_s22, 7 }
   0xf   : > { %s423_s9 = scalar_lea.hbm (!%p190_p9), %s826_s5, %s504_s26  ;;  %s412_s10 = scalar_lea.sflag (!%p190_p9), [#allocation4], %s213_s16 }
  0x10   : > { %s664_s12 = smov (!%p190_p9), [#allocation3]  }
  0x11   : > { %s604_s13 = sshll.u32 (!%p190_p9), %s664_s12, 4  ;;  %s605_s13 = int_to_ptr.vmem [resolvable:$false] %s604_s13 }
  0x13   : > { %v588_v0 = vld [vmem:[%s822_s1 + $0x8] sm:$0xff]   ;;  %v662_v1 = vmov 0.0   ;;  %v589_v2 = vld [vmem:[%s822_s1] sm:$0xff]   ;;  %vm663_vm0 = vmmov 0   ;;  %v590_v3 = vld [vmem:[%s824_s3 + $0x38] sm:$0xff]   ;;  %s217_s11 = scalar_select %p216_p10, %s716_s22, 1 }
  0x14   : > { %519 = vmatprep.subr.bf16.mxu0 %v662_v1  ;;  %527 = vmatprep.subr.bf16.mxu1 %v662_v1  ;;  %v591_v4 = vld [vmem:[%s824_s3 + $0x30] sm:$0xff]   ;;  %vm246_vm1 = vcmask 261120   ;;  %v592_v7 = vld [vmem:[%s824_s3 + $0x28] sm:$0xff]   ;;  %v593_v8 = vld [vmem:[%s824_s3 + $0x20] sm:$0xff]   ;;  %s606_s22 = scalar_lea.vmem %s605_s13, 256 }
  0x15   : > { %520 = vmatpush3.bf16.msra.mxu0 %v588_v0  ;;  %523 = vmatprep.mubr.msk.bf16.mxu0 %vm663_vm0, %v662_v1  ;;  %s489_s14 = sshll.u32 %s217_s11, 3  ;;  %v594_v9 = vld [vmem:[%s824_s3 + $0x18] sm:$0xff]   ;;  %v595_v10 = vld [vmem:[%s824_s3 + $0x10] sm:$0xff]   ;;  %v596_v11 = vld [vmem:[%s824_s3 + $0x8] sm:$0xff]  }
  0x16   : > { %521 = vmatprep.subr.bf16.mxu0 %v662_v1  ;;  %543 = vmatprep.mubr.msk.bf16.mxu1 %vm663_vm0, %v662_v1  ;;  %s219_s17 = scalar_lea.vmem %s821_s0, %s489_s14  ;;  %v597_v12 = vld [vmem:[%s824_s3] sm:$0xff]  }
  0x17   : > { %528 = vmatpush3.bf16.msra.mxu1 %v590_v3  ;;  %v221_v5 = vld [vmem:[%s219_s17] sm:$0xff]  ;;  %s488_s17 = sshll.u32 %s213_s16, 3 }
  0x18   : > { %529 = vmatprep.subr.bf16.mxu1 %v662_v1  ;;  %v222_v6 = vpack.c.bf16 %v221_v5, %v221_v5  ;;  %v490_v13 = vld [vmem:[%s823_s2] ss:$0 sm:$0xff]  ;;  %s215_s30 = scalar_lea.vmem [#allocation3], %s488_s17 }
  0x19   : > { %522 = vmatpush3.bf16.msra.mxu0 %v589_v2  ;;  %v502_v29 = vld [vmem:[%s825_s4] ss:$0 sm:$0xff]  ;;  %s425_s6 = sshll.u32 %s215_s30, 4  ;;  %s426_s6 = int_to_ptr.vmem [resolvable:$true] %s425_s6 }
  0x1a   : > { %s600_s11 = scalar_lea.vmem %s426_s6, 128  ;;  %p607_p0 = scmp.lt.s32.totalorder %s426_s6, %s605_s13 }
  0x1b   : > { %530 = vmatpush3.bf16.msra.mxu1 %v591_v4  ;;  %p601_p11 = scmp.ne.s32.totalorder %s426_s6, %s600_s11  ;;  %p608_p1 = scmp.lt.s32.totalorder %s606_s22, %s600_s11 }
  0x1c   : > { %531 = vmatprep.subr.bf16.mxu1 %v662_v1  ;;  %524 = vmatmul.mubr.msk.bf16.vlgmr.msra.gmra.mxu0 %vm246_vm1, %v222_v6 }
  0x1d   : > { %p602_p12 = pnand %p601_p11, %p733_p5  ;;  %p609_p2 = por %p608_p1, %p607_p0 }
  0x1f   : > { %532 = vmatpush3.bf16.msra.mxu1 %v592_v7  ;;  %p603_p13 = pneg %p602_p12 }
  0x20   : > { %533 = vmatprep.subr.bf16.mxu1 %v662_v1 }
  0x21   : > { %p610_p3 = pnand %p609_p2, %p603_p13 }
  0x23   : > { %534 = vmatpush3.bf16.msra.mxu1 %v593_v8 }
  0x24   : > { %535 = vmatprep.subr.bf16.mxu1 %v662_v1 }
  0x27   : > { %536 = vmatpush3.bf16.msra.mxu1 %v594_v9 }
  0x28   : > { %537 = vmatprep.subr.bf16.mxu1 %v662_v1 }
  0x2b   : > { %538 = vmatpush3.bf16.msra.mxu1 %v595_v10 }
  0x2c   : > { %539 = vmatprep.subr.bf16.mxu1 %v662_v1 }
  0x2f   : > { %540 = vmatpush3.bf16.msra.mxu1 %v596_v11 }
  0x30   : > { %541 = vmatprep.subr.bf16.mxu1 %v662_v1 }
  0x33   : > { %542 = vmatpush3.bf16.msra.mxu1 %v597_v12 }
  0xdc   : > { %v284_v14 = vpop.f32.mrf.mxu0 }
  0xdd   : > { %v285_v15 = vadd.f32 %v490_v13, %v284_v14 }
  0xde   : > { %v525_v16 = vpop.f32.mrf.mxu0 }
  0xdf   : > { %v291_v17 = vmul.f32 0.70710677, %v285_v15  ;;  %v290_v21 = vmul.f32 0.5, %v285_v15 }
  0xe0   : > { %v287_v18 = vpop.f32.mrf.mxu0 }
  0xe1   : > { %598 = verf.f32 %v291_v17 }
  0xe2   : > { %v526_v19 = vpop.f32.mrf.mxu0 }
  0xee   : > { %v599_v20 = vpop.eup %598 }
  0xef   : > { %v293_v22 = vadd.f32 1.0, %v599_v20 }
  0xf1   : > { %v294_v23 = vmul.f32 %v293_v22, %v290_v21 }
  0xf3   : > { %v295_v24 = vpack.c.bf16 %v294_v23, %v294_v23 }
  0xf5   : > { %544 = vmatmul.mubr.bf16.vlgmr.msra.gmra.mxu1 %v295_v24 }
 0x1b5   : > { %v394_v25 = vpop.f32.mrf.mxu1 }
 0x1b6   : > { %400 = vst.msk [vmem:[#allocation2] sm:$0xff] %vm246_vm1, %v394_v25 }
 0x1b7   : > { %v545_v26 = vpop.f32.mrf.mxu1 }
 0x1b9   : > { %v397_v27 = vpop.f32.mrf.mxu1 }
 0x1bb   : > { %v546_v28 = vpop.f32.mrf.mxu1 }
 0x1bd   : > { %v401_v30 = vld [vmem:[#allocation2] sm:$0xff] }
 0x1be   : > { %v409_v31 = vadd.f32 %v502_v29, %v401_v30 }
 0x1c0   : > { %410 = vst.msk [vmem:[%s215_s30] sm:$0xff] %vm246_vm1, %v409_v31 }
 0x1c1   : > { %613 = shalt.err (!%p610_p3)
}
 0x1c2   : > { %s614_s14 = scalar_lea.hbm %s423_s9, 128  ;;  %s618_s17 = scalar_lea.hbm %s826_s5, 256 }
 0x1c3   : > { %p615_p4 = scmp.ne.s32.totalorder %s423_s9, %s614_s14  ;;  %p619_p9 = scmp.lt.s32.totalorder %s423_s9, %s826_s5 }
 0x1c4   : > { %p620_p10 = scmp.lt.s32.totalorder %s618_s17, %s614_s14 }
 0x1c5   : > { %p616_p7 = pnand %p615_p4, %p733_p5 }
 0x1c6   : > { %p621_p11 = por %p620_p10, %p619_p9 }
 0x1c7   : > { %p617_p8 = pneg %p616_p7 }
 0x1c9   : > { %p622_p12 = pnand %p621_p11, %p617_p8 }
 0x1cb   : > { %625 = shalt.err (!%p622_p12)
}
 0x1cc   : > { %547 = dma.vmem_to_hbm [thread:$0]  (%p733_p5), %s426_s6, 128, %s423_s9, %s412_s10  }
 0x1cd PF: > { %p553_p13 = scmp.ge.s32.totalorder %s660_s21, 2  ;;  %s437_s26 = sand.u32 1, %s648_s18  }
 0x1ce   : > { %s438_s30 = scalar_lea.sflag [#allocation4], %s437_s26 }
 0x1cf   : > { %p550_p0 = pnand %p553_p13, %p737_p6 }
 0x1d1   : > { %p551_p1 = pneg %p550_p0 }
 0x1d3   : > { %643 = dma.done.wait (%p551_p1), %s438_s30, 128  }
 0x1d4   : > { %645 = vsyncadd (%p551_p1), %s438_s30, 4294967168  ;;  %p15_p2 = scmp.ge.s32.totalorder %s720_s24, 4   ;;  %s829_s18 = smov %s652_s19 }
 0x1d5   : > { %s830_s19 = smov %s656_s20  ;;  %s831_s20 = smov %s731_s27 }
 0x1d6   : > { %s832_s21 = smov %s720_s24  ;;  %17 = sbr.rel (!%p15_p2) target bundleno = 3 (0x3), region = 75 }
 0x1db   :  { %443 = vsyncpa [#allocation4], 1 }
 0x1dc   :  { %445 = vsyncpa [#allocation4 + $0x1], 1 }

// kernel: tpu_custom_call.1
= control target key start
LH: loop header
LB: loop body
LE: loop exit
PB: predicated region body
PF: predicated region fallthrough
CT: control target
= control target key end

     0   :  { %10 = vsyncpa [#allocation4], 0  ;;  %s821_s0 = inlined_call_operand.vmem [shape: f32[16,32], index: 0, kind: input, shape index: {}]   ;;  %s822_s1 = inlined_call_operand.vmem [shape: bf16[32,128], index: 1, kind: input, shape index: {}]   ;;  %s823_s2 = inlined_call_operand.vmem [shape: f32[1,128], index: 2, kind: input, shape index: {}]   ;;  %s824_s3 = inlined_call_operand.vmem [shape: bf16[128,32], index: 3, kind: input, shape index: {}]   ;;  %s825_s4 = inlined_call_operand.vmem [shape: f32[1,32], index: 4, kind: input, shape index: {}]   ;;  %s826_s5 = inlined_call_operand.hbm [shape: f32[16,32], index: 5, kind: output, shape index: {}]  }
   0x1   :  { %12 = vsyncpa [#allocation4 + $0x1], 0  ;;  %s695_s18 = smov 0   ;;  %s697_s19 = smov 0  }
   0x2   :  { %s699_s20 = smov 0   ;;  %s701_s21 = smov 0  }
   0x3 LB: > { %s716_s22 = sadd.s32 4294967295, %s660_s21   ;;  %s484_s23 = sadd.s32 4294967294, %s660_s21   ;;  %s660_s21 = sphi %s701_s21, %s832_s21   ;;  %s656_s20 = sphi %s699_s20, %s831_s20   ;;  %s652_s19 = sphi %s697_s19, %s830_s19   ;;  %s648_s18 = sphi %s695_s18, %s829_s18  }
   0x4   : > { %s720_s24 = sadd.s32 1, %s660_s21   ;;  %s135_s25 = sadd.s32 1, %s656_s20 }
   0x5   : > { %s132_s26 = ssub.s32 %s660_s21, %s720_s24  ;;  %p145_p0 = scmp.ne.s32.totalorder %s656_s20, %s652_s19 }
   0x6   : > { %p133_p1 = scmp.eq.s32.totalorder %s132_s26, 0  ;;  %p146_p2 = scmp.eq.s32.totalorder %s716_s22, 1 }
   0x7   : > { %p151_p3 = scmp.ne.s32.totalorder %s652_s19, %s648_s18  ;;  %p152_p4 = scmp.eq.s32.totalorder %s484_s23, 1 }
   0x8   : > { %s731_s27 = scalar_select %p133_p1, %s656_s20, %s135_s25  }
   0x9   : > { %p733_p5 = por %p146_p2, %p145_p0  ;;  %p737_p6 = por %p152_p4, %p151_p3 }
   0xa   : > { %p487_p7 = scmp.ge.s32.totalorder %s660_s21, 1  ;;  %p189_p8 = scmp.lt.s32.totalorder %s660_s21, 3 }
   0xc   : > { %p190_p9 = pnand %p487_p7, %p189_p8 }
   0xd   : > { %p216_p10 = scmp.lt.s32.totalorder (!%p190_p9), %s716_s22, 1  ;;  %s213_s16 = sand.u32 (!%p190_p9), 1, %s652_s19  }
   0xe   : > { %193 = sbr.rel (%p190_p9) target bundleno = 461 (0x1cd), region = 40  ;;  %s504_s26 = sshll.u32 (!%p190_p9), %s716_s22, 7 }
   0xf   : > { %s423_s9 = scalar_lea.hbm (!%p190_p9), %s826_s5, %s504_s26  ;;  %s412_s10 = scalar_lea.sflag (!%p190_p9), [#allocation4], %s213_s16 }
  0x10   : > { %s664_s12 = smov (!%p190_p9), [#allocation3]  }
  0x11   : > { %s604_s13 = sshll.u32 (!%p190_p9), %s664_s12, 4  ;;  %s605_s13 = int_to_ptr.vmem [resolvable:$false] %s604_s13 }
  0x13   : > { %v588_v0 = vld [vmem:[%s822_s1 + $0x8] sm:$0xff]   ;;  %v662_v1 = vmov 0.0   ;;  %v589_v2 = vld [vmem:[%s822_s1] sm:$0xff]   ;;  %vm663_vm0 = vmmov 0   ;;  %v590_v3 = vld [vmem:[%s824_s3 + $0x38] sm:$0xff]   ;;  %s217_s11 = scalar_select %p216_p10, %s716_s22, 1 }
  0x14   : > { %519 = vmatprep.subr.bf16.mxu0 %v662_v1  ;;  %527 = vmatprep.subr.bf16.mxu1 %v662_v1  ;;  %v591_v4 = vld [vmem:[%s824_s3 + $0x30] sm:$0xff]   ;;  %vm246_vm1 = vcmask 261120   ;;  %v592_v7 = vld [vmem:[%s824_s3 + $0x28] sm:$0xff]   ;;  %v593_v8 = vld [vmem:[%s824_s3 + $0x20] sm:$0xff]   ;;  %s606_s22 = scalar_lea.vmem %s605_s13, 256 }
  0x15   : > { %520 = vmatpush3.bf16.msra.mxu0 %v588_v0  ;;  %523 = vmatprep.mubr.msk.bf16.mxu0 %vm663_vm0, %v662_v1  ;;  %s489_s14 = sshll.u32 %s217_s11, 3  ;;  %v594_v9 = vld [vmem:[%s824_s3 + $0x18] sm:$0xff]   ;;  %v595_v10 = vld [vmem:[%s824_s3 + $0x10] sm:$0xff]   ;;  %v596_v11 = vld [vmem:[%s824_s3 + $0x8] sm:$0xff]  }
  0x16   : > { %521 = vmatprep.subr.bf16.mxu0 %v662_v1  ;;  %543 = vmatprep.mubr.msk.bf16.mxu1 %vm663_vm0, %v662_v1  ;;  %s219_s17 = scalar_lea.vmem %s821_s0, %s489_s14  ;;  %v597_v12 = vld [vmem:[%s824_s3] sm:$0xff]  }
  0x17   : > { %528 = vmatpush3.bf16.msra.mxu1 %v590_v3  ;;  %v221_v5 = vld [vmem:[%s219_s17] sm:$0xff]  ;;  %s488_s17 = sshll.u32 %s213_s16, 3 }
  0x18   : > { %529 = vmatprep.subr.bf16.mxu1 %v662_v1  ;;  %v222_v6 = vpack.c.bf16 %v221_v5, %v221_v5  ;;  %v490_v13 = vld [vmem:[%s823_s2] ss:$0 sm:$0xff]  ;;  %s215_s30 = scalar_lea.vmem [#allocation3], %s488_s17 }
  0x19   : > { %522 = vmatpush3.bf16.msra.mxu0 %v589_v2  ;;  %v502_v29 = vld [vmem:[%s825_s4] ss:$0 sm:$0xff]  ;;  %s425_s6 = sshll.u32 %s215_s30, 4  ;;  %s426_s6 = int_to_ptr.vmem [resolvable:$true] %s425_s6 }
  0x1a   : > { %s600_s11 = scalar_lea.vmem %s426_s6, 128  ;;  %p607_p0 = scmp.lt.s32.totalorder %s426_s6, %s605_s13 }
  0x1b   : > { %530 = vmatpush3.bf16.msra.mxu1 %v591_v4  ;;  %p601_p11 = scmp.ne.s32.totalorder %s426_s6, %s600_s11  ;;  %p608_p1 = scmp.lt.s32.totalorder %s606_s22, %s600_s11 }
  0x1c   : > { %531 = vmatprep.subr.bf16.mxu1 %v662_v1  ;;  %524 = vmatmul.mubr.msk.bf16.vlgmr.msra.gmra.mxu0 %vm246_vm1, %v222_v6 }
  0x1d   : > { %p602_p12 = pnand %p601_p11, %p733_p5  ;;  %p609_p2 = por %p608_p1, %p607_p0 }
  0x1f   : > { %532 = vmatpush3.bf16.msra.mxu1 %v592_v7  ;;  %p603_p13 = pneg %p602_p12 }
  0x20   : > { %533 = vmatprep.subr.bf16.mxu1 %v662_v1 }
  0x21   : > { %p610_p3 = pnand %p609_p2, %p603_p13 }
  0x23   : > { %534 = vmatpush3.bf16.msra.mxu1 %v593_v8 }
  0x24   : > { %535 = vmatprep.subr.bf16.mxu1 %v662_v1 }
  0x27   : > { %536 = vmatpush3.bf16.msra.mxu1 %v594_v9 }
  0x28   : > { %537 = vmatprep.subr.bf16.mxu1 %v662_v1 }
  0x2b   : > { %538 = vmatpush3.bf16.msra.mxu1 %v595_v10 }
  0x2c   : > { %539 = vmatprep.subr.bf16.mxu1 %v662_v1 }
  0x2f   : > { %540 = vmatpush3.bf16.msra.mxu1 %v596_v11 }
  0x30   : > { %541 = vmatprep.subr.bf16.mxu1 %v662_v1 }
  0x33   : > { %542 = vmatpush3.bf16.msra.mxu1 %v597_v12 }
  0xdc   : > { %v284_v14 = vpop.f32.mrf.mxu0 }
  0xdd   : > { %v285_v15 = vadd.f32 %v490_v13, %v284_v14 }
  0xde   : > { %v525_v16 = vpop.f32.mrf.mxu0 }
  0xdf   : > { %v291_v17 = vmul.f32 0.70710677, %v285_v15  ;;  %v290_v21 = vmul.f32 0.5, %v285_v15 }
  0xe0   : > { %v287_v18 = vpop.f32.mrf.mxu0 }
  0xe1   : > { %598 = verf.f32 %v291_v17 }
  0xe2   : > { %v526_v19 = vpop.f32.mrf.mxu0 }
  0xee   : > { %v599_v20 = vpop.eup %598 }
  0xef   : > { %v293_v22 = vadd.f32 1.0, %v599_v20 }
  0xf1   : > { %v294_v23 = vmul.f32 %v293_v22, %v290_v21 }
  0xf3   : > { %v295_v24 = vpack.c.bf16 %v294_v23, %v294_v23 }
  0xf5   : > { %544 = vmatmul.mubr.bf16.vlgmr.msra.gmra.mxu1 %v295_v24 }
 0x1b5   : > { %v394_v25 = vpop.f32.mrf.mxu1 }
 0x1b6   : > { %400 = vst.msk [vmem:[#allocation2] sm:$0xff] %vm246_vm1, %v394_v25 }
 0x1b7   : > { %v545_v26 = vpop.f32.mrf.mxu1 }
 0x1b9   : > { %v397_v27 = vpop.f32.mrf.mxu1 }
 0x1bb   : > { %v546_v28 = vpop.f32.mrf.mxu1 }
 0x1bd   : > { %v401_v30 = vld [vmem:[#allocation2] sm:$0xff] }
 0x1be   : > { %v409_v31 = vadd.f32 %v502_v29, %v401_v30 }
 0x1c0   : > { %410 = vst.msk [vmem:[%s215_s30] sm:$0xff] %vm246_vm1, %v409_v31 }
 0x1c1   : > { %613 = shalt.err (!%p610_p3)
}
 0x1c2   : > { %s614_s14 = scalar_lea.hbm %s423_s9, 128  ;;  %s618_s17 = scalar_lea.hbm %s826_s5, 256 }
 0x1c3   : > { %p615_p4 = scmp.ne.s32.totalorder %s423_s9, %s614_s14  ;;  %p619_p9 = scmp.lt.s32.totalorder %s423_s9, %s826_s5 }
 0x1c4   : > { %p620_p10 = scmp.lt.s32.totalorder %s618_s17, %s614_s14 }
 0x1c5   : > { %p616_p7 = pnand %p615_p4, %p733_p5 }
 0x1c6   : > { %p621_p11 = por %p620_p10, %p619_p9 }
 0x1c7   : > { %p617_p8 = pneg %p616_p7 }
 0x1c9   : > { %p622_p12 = pnand %p621_p11, %p617_p8 }
 0x1cb   : > { %625 = shalt.err (!%p622_p12)
}
 0x1cc   : > { %547 = dma.vmem_to_hbm [thread:$0]  (%p733_p5), %s426_s6, 128, %s423_s9, %s412_s10  }
 0x1cd PF: > { %p553_p13 = scmp.ge.s32.totalorder %s660_s21, 2  ;;  %s437_s26 = sand.u32 1, %s648_s18  }
 0x1ce   : > { %s438_s30 = scalar_lea.sflag [#allocation4], %s437_s26 }
 0x1cf   : > { %p550_p0 = pnand %p553_p13, %p737_p6 }
 0x1d1   : > { %p551_p1 = pneg %p550_p0 }
 0x1d3   : > { %643 = dma.done.wait (%p551_p1), %s438_s30, 128  }
 0x1d4   : > { %645 = vsyncadd (%p551_p1), %s438_s30, 4294967168  ;;  %p15_p2 = scmp.ge.s32.totalorder %s720_s24, 4   ;;  %s829_s18 = smov %s652_s19 }
 0x1d5   : > { %s830_s19 = smov %s656_s20  ;;  %s831_s20 = smov %s731_s27 }
 0x1d6   : > { %s832_s21 = smov %s720_s24  ;;  %17 = sbr.rel (!%p15_p2) target bundleno = 3 (0x3), region = 75 }
 0x1db   :  { %443 = vsyncpa [#allocation4], 1 }
 0x1dc   :  { %445 = vsyncpa [#allocation4 + $0x1], 1 }

</bundles_post_ra>
